<compile_context>
chip_gen: v5e
topology: v5e:2x2
jax: 0.10.0
libtpu: 0.0.40
codegen_flags: <defaults>
</compile_context>

<pallas_src>
import functools

import jax
import jax.numpy as jnp
from jax.experimental import pallas as pl
from jax.experimental.pallas import tpu as pltpu
import numpy as np


def _round_up(x: int, m: int) -> int:
    return pl.cdiv(x, m) * m


def _choose_tile_b(B: int) -> int:
    """Batch tile: biggest aligned tile <=256, preferring >=2 grid steps (v7x megacore);
    small / unaligned batches become a single full-batch block (no padding needed)."""
    if B < 8 or B % 8 != 0:
        return B
    for t in (256, 128, 64, 32, 16, 8):
        if B % t == 0 and B // t >= 2:
            return t
    return B  # B itself is one aligned tile (e.g. B == 8)


# ----------------------------- Pallas kernel -------------------------------

def _policy_kernel(x_ref, w1_ref, b1_ref, w2_ref, b2_ref, wh_ref, bh_ref,
                   out_ref, *, gw: int, gh: int):
    x = x_ref[...]

    # fc1 + ReLU   (K -> 128)
    h1 = jnp.dot(x, w1_ref[...], preferred_element_type=jnp.float32) + b1_ref[...]
    h1 = jnp.maximum(h1, 0.0)

    # fc2 + ReLU   (128 -> 64)
    h2 = jnp.dot(h1, w2_ref[...], preferred_element_type=jnp.float32) + b2_ref[...]
    h2 = jnp.maximum(h2, 0.0)

    # fused heads: one matmul producing [tile_b, N_pad] logits (x-head in lanes
    # [0, gw), y-head in lanes [gw, gw+gh), remaining lanes are zero padding).
    logits = jnp.dot(h2, wh_ref[...], preferred_element_type=jnp.float32) + bh_ref[...]

    col = jax.lax.broadcasted_iota(jnp.int32, logits.shape, 1)
    mask_x = col < gw
    mask_y = jnp.logical_and(col >= gw, col < gw + gh)
    valid = col < gw + gh

    # Single-exp segmented softmax: per-lane segment max, one exp pass over the slab,
    # two masked sums, per-lane reciprocal select.  Invalid lanes underflow to 0.
    neg = jnp.float32(-1e30)
    mx = jnp.max(jnp.where(mask_x, logits, neg), axis=-1, keepdims=True)
    my = jnp.max(jnp.where(mask_y, logits, neg), axis=-1, keepdims=True)
    shift = jnp.where(mask_x, mx, my)
    e = jnp.exp(jnp.where(valid, logits - shift, neg))
    sx = jnp.sum(jnp.where(mask_x, e, 0.0), axis=-1, keepdims=True)
    sy = jnp.sum(jnp.where(mask_y, e, 0.0), axis=-1, keepdims=True)
    inv = jnp.where(mask_x,
                    pl.reciprocal(sx, approx=False),
                    pl.reciprocal(sy, approx=False))

    # One dense, unmasked [tile_b, N_pad] store (padded lanes are exactly 0).
    out_ref[...] = e * inv


# --------------------------- one-time param prep ----------------------------

def make_forward_params(params):
    """One-time head fusion / zero padding.  Call once (not per forward step)."""
    w2 = params["w2"]
    wx, bx = params["wx"], params["bx"]
    wy, by = params["wy"], params["by"]
    H2 = w2.shape[1]
    gw, gh = wx.shape[1], wy.shape[1]
    N = gw + gh
    N_pad = _round_up(max(N, 128), 128)   # lane-dense output slab

    wh = (jnp.zeros((H2, N_pad), jnp.float32)
          .at[:, :gw].set(wx).at[:, gw:N].set(wy))
    bh = (jnp.zeros((1, N_pad), jnp.float32)
          .at[:, :gw].set(bx).at[:, gw:N].set(by))

    return {
        "w1": params["w1"].astype(jnp.float32), "b1": params["b1"].astype(jnp.float32),
        "w2": w2.astype(jnp.float32),           "b2": params["b2"].astype(jnp.float32),
        "wh": wh, "bh": bh, "gw": gw, "gh": gh, "n_pad": N_pad,
    }


# ------------------------------ forward wrapper ------------------------------

def policy_network_forward(state, fwd):
    """state: [B, grid_w*grid_h + embedding_dim] f32 -> (prob_x [B, gw], prob_y [B, gh])."""
    state = state.astype(jnp.float32)
    B, K = state.shape
    H1 = fwd["w1"].shape[1]          # 128
    H2 = fwd["w2"].shape[1]          # 64
    gw, gh, N_pad = fwd["gw"], fwd["gh"], fwd["n_pad"]
    N = gw + gh

    tile_b = _choose_tile_b(B)
    grid = (B // tile_b,)

    in_specs = [
        pl.BlockSpec((tile_b, K), lambda i: (i, 0)),   # activations: K unpadded (full dim)
        pl.BlockSpec((K, H1),     lambda i: (0, 0)),   # grid-invariant weights / biases:
        pl.BlockSpec((1, H1),     lambda i: (0, 0)),   #  stay resident in VMEM across
        pl.BlockSpec((H1, H2),    lambda i: (0, 0)),   #  batch-grid steps
        pl.BlockSpec((1, H2),     lambda i: (0, 0)),
        pl.BlockSpec((H2, N_pad), lambda i: (0, 0)),
        pl.BlockSpec((1, N_pad),  lambda i: (0, 0)),
    ]
    out_specs = pl.BlockSpec((tile_b, N_pad), lambda i: (i, 0))

    flops = 2 * B * (K * H1 + H1 * H2 + H2 * N_pad)
    bytes_accessed = 4 * (state.size + fwd["w1"].size + fwd["b1"].size
                          + fwd["w2"].size + fwd["b2"].size
                          + fwd["wh"].size + fwd["bh"].size + B * N_pad)

    out = pl.pallas_call(
        functools.partial(_policy_kernel, gw=gw, gh=gh),
        out_shape=jax.ShapeDtypeStruct((B, N_pad), jnp.float32),
        grid=grid,
        in_specs=in_specs,
        out_specs=out_specs,
        compiler_params=pltpu.CompilerParams(
            dimension_semantics=("parallel",)),
        cost_estimate=pl.CostEstimate(
            flops=int(flops),
            transcendentals=int(B * N_pad),
            bytes_accessed=int(bytes_accessed)),
    )(state, fwd["w1"], fwd["b1"], fwd["w2"], fwd["b2"], fwd["wh"], fwd["bh"])

    prob_x = out[:, :gw]
    prob_y = out[:, gw:N]
    return prob_x, prob_y


# ------------------------- parameter construction --------------------------

def init_params(key, grid_width, grid_height, num_machine_types, embedding_dim=10):
    """Deterministic init matching nn.Linear / nn.Embedding shapes.

    Linear(in, out): W ~ U(-1/sqrt(in), 1/sqrt(in)), stored [in, out]; b same range, [1, out].
    Embedding(num, dim): N(0, 1), [num, dim].
    """
    input_size = grid_width * grid_height + embedding_dim

    def linear(key, fan_in, fan_out):
        kw, kb = jax.random.split(key)
        bound = 1.0 / np.sqrt(fan_in)
        w = jax.random.uniform(kw, (fan_in, fan_out), jnp.float32, -bound, bound)
        b = jax.random.uniform(kb, (1, fan_out), jnp.float32, -bound, bound)
        return w, b

    k_emb, k1, k2, kx, ky = jax.random.split(key, 5)
    emb = jax.random.normal(k_emb, (num_machine_types, embedding_dim), jnp.float32)
    w1, b1 = linear(k1, input_size, 128)
    w2, b2 = linear(k2, 128, 64)
    wx, bx = linear(kx, 64, grid_width)
    wy, by = linear(ky, 64, grid_height)
    return {"embedding": emb, "w1": w1, "b1": b1, "w2": w2, "b2": b2,
            "wx": wx, "bx": bx, "wy": wy, "by": by}


def get_state_representation(params, grid_flat, machine_ids):
    """Plain-JAX glue mirroring PolicyNetwork.get_state_representation (batched).

    grid_flat: [B, grid_w*grid_h] f32 already normalized by (num_machines - 1).
    machine_ids: [B] int32 -> embedding lookup, concatenated onto the grid.
    """
    emb = params["embedding"][machine_ids]          # [B, embedding_dim]
    return jnp.concatenate([grid_flat, emb], axis=-1)


# ------------------------------- reference ---------------------------------

def reference_forward(state, params):
    h1 = jax.nn.relu(state @ params["w1"] + params["b1"])
    h2 = jax.nn.relu(h1 @ params["w2"] + params["b2"])
    px = jax.nn.softmax(h2 @ params["wx"] + params["bx"], axis=-1)
    py = jax.nn.softmax(h2 @ params["wy"] + params["by"], axis=-1)
    return px, py


# --------------------------------- main -------------------------------------

if __name__ == "__main__":
    machines_definitions = [
        {"id": 0, "name": "선반_A", "footprint": (2, 3)},
        {"id": 1, "name": "밀링_B", "footprint": (3, 2)},
        {"id": 2, "name": "검사_C", "footprint": (1, 2)},
        {"id": 3, "name": "조립_D", "footprint": (2, 2)},
    ]
    num_machine_types = len(machines_definitions)   # 4
    grid_width, grid_height, embedding_dim = 10, 10, 10
    batch = 2

    key = jax.random.PRNGKey(0)
    k_params, k_grid, k_mid = jax.random.split(key, 3)

    params = init_params(k_params, grid_width, grid_height,
                         num_machine_types, embedding_dim)
    # One-time head fusion / padding — hoisted out of the per-call path.
    fwd_params = make_forward_params(params)
    fwd_params = jax.tree_util.tree_map(
        lambda x: jax.block_until_ready(x) if isinstance(x, jax.Array) else x, fwd_params)

    # Synthetic "current grid" states: random machine ids on the grid,
    # flattened and normalized by (num_machine_types - 1), as in the module.
    grid_ints = jax.random.randint(
        k_grid, (batch, grid_width * grid_height), 0, num_machine_types)
    grid_flat = grid_ints.astype(jnp.float32) / (num_machine_types - 1)
    machine_ids = jax.random.randint(k_mid, (batch,), 0, num_machine_types)

    state = get_state_representation(params, grid_flat, machine_ids)  # [B, 110]

    prob_x, prob_y = policy_network_forward(state, fwd_params)
    prob_x = jax.block_until_ready(prob_x)
    prob_y = jax.block_until_ready(prob_y)

    # Correctness check against a pure-JAX reference.
    ref_x, ref_y = reference_forward(state, params)
    np.testing.assert_allclose(np.asarray(prob_x), np.asarray(ref_x), rtol=1e-5, atol=1e-5)
    np.testing.assert_allclose(np.asarray(prob_y), np.asarray(ref_y), rtol=1e-5, atol=1e-5)
    assert prob_x.shape == (batch, grid_width) and prob_y.shape == (batch, grid_height)
    np.testing.assert_allclose(np.asarray(prob_x).sum(-1), 1.0, rtol=1e-5)
    np.testing.assert_allclose(np.asarray(prob_y).sum(-1), 1.0, rtol=1e-5)

    print("KERNEL_OK")
</pallas_src>

<mosaic_0001>
module attributes {stable_mosaic.version = 11 : i64} {
  func.func @_policy_kernel(%arg0: i32, %arg1: memref<2x110xf32, #tpu.memory_space<vmem>>, %arg2: memref<110x128xf32, #tpu.memory_space<vmem>>, %arg3: memref<1x128xf32, #tpu.memory_space<vmem>>, %arg4: memref<128x64xf32, #tpu.memory_space<vmem>>, %arg5: memref<1x64xf32, #tpu.memory_space<vmem>>, %arg6: memref<64x128xf32, #tpu.memory_space<vmem>>, %arg7: memref<1x128xf32, #tpu.memory_space<vmem>>, %arg8: memref<2x128xf32, #tpu.memory_space<vmem>>) attributes {dimension_semantics = [#tpu.dimension_semantics<parallel>], iteration_bounds = array<i64: 1>, scalar_prefetch = 0 : i64, scratch_operands = 0 : i64, tpu.core_type = #tpu.core_type<tc>, window_params = [{transform_indices = @transform_0, window_bounds = array<i64: 2, 110>}, {pipeline_mode = #tpu.pipeline_mode<synchronous>, transform_indices = @transform_1, window_bounds = array<i64: 110, 128>}, {pipeline_mode = #tpu.pipeline_mode<synchronous>, transform_indices = @transform_2, window_bounds = array<i64: 1, 128>}, {pipeline_mode = #tpu.pipeline_mode<synchronous>, transform_indices = @transform_3, window_bounds = array<i64: 128, 64>}, {pipeline_mode = #tpu.pipeline_mode<synchronous>, transform_indices = @transform_4, window_bounds = array<i64: 1, 64>}, {pipeline_mode = #tpu.pipeline_mode<synchronous>, transform_indices = @transform_5, window_bounds = array<i64: 64, 128>}, {pipeline_mode = #tpu.pipeline_mode<synchronous>, transform_indices = @transform_6, window_bounds = array<i64: 1, 128>}, {transform_indices = @transform_7, window_bounds = array<i64: 2, 128>}]} {
    %c0 = arith.constant 0 : index
    %c0_0 = arith.constant 0 : index
    %0 = vector.load %arg1[%c0, %c0_0] : memref<2x110xf32, #tpu.memory_space<vmem>>, vector<2x110xf32>
    %c0_1 = arith.constant 0 : index
    %c0_2 = arith.constant 0 : index
    %1 = vector.load %arg2[%c0_1, %c0_2] : memref<110x128xf32, #tpu.memory_space<vmem>>, vector<110x128xf32>
    %cst = arith.constant dense<0.000000e+00> : vector<2x128xf32>
    %2 = tpu.matmul %0, %1, %cst {dimension_numbers = #tpu.dot_dimension_numbers<[1], [0], [0], [1], [0, 0, 1, 1], [], []>} : vector<2x110xf32>, vector<110x128xf32>, vector<2x128xf32> -> vector<2x128xf32>
    %c0_3 = arith.constant 0 : index
    %c0_4 = arith.constant 0 : index
    %3 = vector.load %arg3[%c0_3, %c0_4] : memref<1x128xf32, #tpu.memory_space<vmem>>, vector<1x128xf32>
    %4 = vector.broadcast %3 : vector<1x128xf32> to vector<2x128xf32>
    %5 = arith.addf %2, %4 : vector<2x128xf32>
    %cst_5 = arith.constant 0.000000e+00 : f32
    %6 = vector.broadcast %cst_5 : f32 to vector<2x128xf32>
    %7 = arith.maximumf %5, %6 : vector<2x128xf32>
    %c0_6 = arith.constant 0 : index
    %c0_7 = arith.constant 0 : index
    %8 = vector.load %arg4[%c0_6, %c0_7] : memref<128x64xf32, #tpu.memory_space<vmem>>, vector<128x64xf32>
    %cst_8 = arith.constant dense<0.000000e+00> : vector<2x64xf32>
    %9 = tpu.matmul %7, %8, %cst_8 {dimension_numbers = #tpu.dot_dimension_numbers<[1], [0], [0], [1], [0, 0, 1, 1], [], []>} : vector<2x128xf32>, vector<128x64xf32>, vector<2x64xf32> -> vector<2x64xf32>
    %c0_9 = arith.constant 0 : index
    %c0_10 = arith.constant 0 : index
    %10 = vector.load %arg5[%c0_9, %c0_10] : memref<1x64xf32, #tpu.memory_space<vmem>>, vector<1x64xf32>
    %11 = vector.broadcast %10 : vector<1x64xf32> to vector<2x64xf32>
    %12 = arith.addf %9, %11 : vector<2x64xf32>
    %cst_11 = arith.constant 0.000000e+00 : f32
    %13 = vector.broadcast %cst_11 : f32 to vector<2x64xf32>
    %14 = arith.maximumf %12, %13 : vector<2x64xf32>
    %c0_12 = arith.constant 0 : index
    %c0_13 = arith.constant 0 : index
    %15 = vector.load %arg6[%c0_12, %c0_13] : memref<64x128xf32, #tpu.memory_space<vmem>>, vector<64x128xf32>
    %cst_14 = arith.constant dense<0.000000e+00> : vector<2x128xf32>
    %16 = tpu.matmul %14, %15, %cst_14 {dimension_numbers = #tpu.dot_dimension_numbers<[1], [0], [0], [1], [0, 0, 1, 1], [], []>} : vector<2x64xf32>, vector<64x128xf32>, vector<2x128xf32> -> vector<2x128xf32>
    %c0_15 = arith.constant 0 : index
    %c0_16 = arith.constant 0 : index
    %17 = vector.load %arg7[%c0_15, %c0_16] : memref<1x128xf32, #tpu.memory_space<vmem>>, vector<1x128xf32>
    %18 = vector.broadcast %17 : vector<1x128xf32> to vector<2x128xf32>
    %19 = arith.addf %16, %18 : vector<2x128xf32>
    %20 = tpu.iota {dimensions = array<i32: 1>} : vector<2x128xi32>
    %c10_i32 = arith.constant 10 : i32
    %21 = vector.broadcast %c10_i32 : i32 to vector<2x128xi32>
    %22 = arith.cmpi slt, %20, %21 : vector<2x128xi32>
    %c10_i32_17 = arith.constant 10 : i32
    %23 = vector.broadcast %c10_i32_17 : i32 to vector<2x128xi32>
    %24 = arith.cmpi sge, %20, %23 : vector<2x128xi32>
    %c20_i32 = arith.constant 20 : i32
    %25 = vector.broadcast %c20_i32 : i32 to vector<2x128xi32>
    %26 = arith.cmpi slt, %20, %25 : vector<2x128xi32>
    %27 = arith.andi %24, %26 : vector<2x128xi1>
    %c20_i32_18 = arith.constant 20 : i32
    %28 = vector.broadcast %c20_i32_18 : i32 to vector<2x128xi32>
    %29 = arith.cmpi slt, %20, %28 : vector<2x128xi32>
    %cst_19 = arith.constant -1.000000e+30 : f32
    %30 = vector.broadcast %cst_19 : f32 to vector<2x128xf32>
    %31 = arith.select %22, %19, %30 : vector<2x128xi1>, vector<2x128xf32>
    %cst_20 = arith.constant dense<0xFF800000> : vector<2xf32>
    %32 = vector.multi_reduction <maximumf>, %31, %cst_20 [1] : vector<2x128xf32> to vector<2xf32>
    %33 = vector.shape_cast %32 : vector<2xf32> to vector<2x1xf32>
    %cst_21 = arith.constant -1.000000e+30 : f32
    %34 = vector.broadcast %cst_21 : f32 to vector<2x128xf32>
    %35 = arith.select %27, %19, %34 : vector<2x128xi1>, vector<2x128xf32>
    %cst_22 = arith.constant dense<0xFF800000> : vector<2xf32>
    %36 = vector.multi_reduction <maximumf>, %35, %cst_22 [1] : vector<2x128xf32> to vector<2xf32>
    %37 = vector.shape_cast %36 : vector<2xf32> to vector<2x1xf32>
    %38 = vector.shape_cast %33 : vector<2x1xf32> to vector<2x1xf32>
    %39 = vector.broadcast %38 : vector<2x1xf32> to vector<2x128xf32>
    %40 = vector.shape_cast %37 : vector<2x1xf32> to vector<2x1xf32>
    %41 = vector.broadcast %40 : vector<2x1xf32> to vector<2x128xf32>
    %42 = arith.select %22, %39, %41 : vector<2x128xi1>, vector<2x128xf32>
    %43 = arith.subf %19, %42 : vector<2x128xf32>
    %cst_23 = arith.constant -1.000000e+30 : f32
    %44 = vector.broadcast %cst_23 : f32 to vector<2x128xf32>
    %45 = arith.select %29, %43, %44 : vector<2x128xi1>, vector<2x128xf32>
    %46 = math.exp %45 : vector<2x128xf32>
    %cst_24 = arith.constant 0.000000e+00 : f32
    %47 = vector.broadcast %cst_24 : f32 to vector<2x128xf32>
    %48 = arith.select %22, %46, %47 : vector<2x128xi1>, vector<2x128xf32>
    %cst_25 = arith.constant dense<0.000000e+00> : vector<2xf32>
    %49 = vector.multi_reduction <add>, %48, %cst_25 [1] : vector<2x128xf32> to vector<2xf32>
    %50 = vector.shape_cast %49 : vector<2xf32> to vector<2x1xf32>
    %cst_26 = arith.constant 0.000000e+00 : f32
    %51 = vector.broadcast %cst_26 : f32 to vector<2x128xf32>
    %52 = arith.select %27, %46, %51 : vector<2x128xi1>, vector<2x128xf32>
    %cst_27 = arith.constant dense<0.000000e+00> : vector<2xf32>
    %53 = vector.multi_reduction <add>, %52, %cst_27 [1] : vector<2x128xf32> to vector<2xf32>
    %54 = vector.shape_cast %53 : vector<2xf32> to vector<2x1xf32>
    %55 = tpu.reciprocal %50 : vector<2x1xf32> -> vector<2x1xf32>
    %56 = tpu.reciprocal %54 : vector<2x1xf32> -> vector<2x1xf32>
    %57 = vector.shape_cast %55 : vector<2x1xf32> to vector<2x1xf32>
    %58 = vector.broadcast %57 : vector<2x1xf32> to vector<2x128xf32>
    %59 = vector.shape_cast %56 : vector<2x1xf32> to vector<2x1xf32>
    %60 = vector.broadcast %59 : vector<2x1xf32> to vector<2x128xf32>
    %61 = arith.select %22, %58, %60 : vector<2x128xi1>, vector<2x128xf32>
    %62 = arith.mulf %46, %61 : vector<2x128xf32>
    %c0_28 = arith.constant 0 : index
    %c0_29 = arith.constant 0 : index
    %63 = vector.load %arg8[%c0_28, %c0_29] : memref<2x128xf32, #tpu.memory_space<vmem>>, vector<2x128xf32>
    tpu.vector_store %arg8[%c0_28, %c0_29], %62 {strides = array<i32>} : memref<2x128xf32, #tpu.memory_space<vmem>>, vector<2x128xf32>,
    return
  }
  func.func @transform_0(%arg0: i32) -> (i32, i32) {
    %c0_i32 = arith.constant 0 : i32
    %c0_i32_0 = arith.constant 0 : i32
    return %arg0, %c0_i32 : i32, i32
  }
  func.func @transform_1(%arg0: i32) -> (i32, i32) {
    %c0_i32 = arith.constant 0 : i32
    %c0_i32_0 = arith.constant 0 : i32
    %c0_i32_1 = arith.constant 0 : i32
    return %c0_i32, %c0_i32_0 : i32, i32
  }
  func.func @transform_2(%arg0: i32) -> (i32, i32) {
    %c0_i32 = arith.constant 0 : i32
    %c0_i32_0 = arith.constant 0 : i32
    %c0_i32_1 = arith.constant 0 : i32
    return %c0_i32, %c0_i32_0 : i32, i32
  }
  func.func @transform_3(%arg0: i32) -> (i32, i32) {
    %c0_i32 = arith.constant 0 : i32
    %c0_i32_0 = arith.constant 0 : i32
    %c0_i32_1 = arith.constant 0 : i32
    return %c0_i32, %c0_i32_0 : i32, i32
  }
  func.func @transform_4(%arg0: i32) -> (i32, i32) {
    %c0_i32 = arith.constant 0 : i32
    %c0_i32_0 = arith.constant 0 : i32
    %c0_i32_1 = arith.constant 0 : i32
    return %c0_i32, %c0_i32_0 : i32, i32
  }
  func.func @transform_5(%arg0: i32) -> (i32, i32) {
    %c0_i32 = arith.constant 0 : i32
    %c0_i32_0 = arith.constant 0 : i32
    %c0_i32_1 = arith.constant 0 : i32
    return %c0_i32, %c0_i32_0 : i32, i32
  }
  func.func @transform_6(%arg0: i32) -> (i32, i32) {
    %c0_i32 = arith.constant 0 : i32
    %c0_i32_0 = arith.constant 0 : i32
    %c0_i32_1 = arith.constant 0 : i32
    return %c0_i32, %c0_i32_0 : i32, i32
  }
  func.func @transform_7(%arg0: i32) -> (i32, i32) {
    %c0_i32 = arith.constant 0 : i32
    %c0_i32_0 = arith.constant 0 : i32
    return %arg0, %c0_i32 : i32, i32
  }
}

</mosaic_0001>

<bundles_post_ra>
// kernel: tpu_custom_call.1
= control target key start
LH: loop header
LB: loop body
LE: loop exit
PB: predicated region body
PF: predicated region fallthrough
CT: control target
= control target key end

     0   :  { %vm50_vm0 = vcmask 1045504   ;;  %s461_s0 = inlined_call_operand.vmem [shape: f32[2,110], index: 0, kind: input, shape index: {}]   ;;  %s462_s1 = inlined_call_operand.vmem [shape: f32[110,128], index: 1, kind: input, shape index: {}]   ;;  %s463_s2 = inlined_call_operand.vmem [shape: f32[1,128], index: 2, kind: input, shape index: {}]   ;;  %s464_s3 = inlined_call_operand.vmem [shape: f32[128,64], index: 3, kind: input, shape index: {}]   ;;  %s465_s4 = inlined_call_operand.vmem [shape: f32[1,64], index: 4, kind: input, shape index: {}]   ;;  %s466_s5 = inlined_call_operand.vmem [shape: f32[64,128], index: 5, kind: input, shape index: {}]   ;;  %s467_s6 = inlined_call_operand.vmem [shape: f32[1,128], index: 6, kind: input, shape index: {}]   ;;  %s468_s7 = inlined_call_operand.hbm [shape: f32[2,128], index: 7, kind: output, shape index: {}]  }
   0x1   :  { %v41_v0 = vld [vmem:[%s462_s1 + $0x68] sm:$0x3f]  ;;  %v40_v1 = vld [vmem:[%s462_s1 + $0x60] sm:$0xff]  ;;  %v39_v2 = vld [vmem:[%s462_s1 + $0x58] sm:$0xff] }
   0x2   :  { %227 = vmatpush.msk.msra.mxu0 %vm50_vm0, %v41_v0  ;;  %v38_v3 = vld [vmem:[%s462_s1 + $0x50] sm:$0xff]  ;;  %v90_v4 = vld [vmem:[%s464_s3 + $0x78] sm:$0xff]  ;;  %v37_v6 = vld [vmem:[%s462_s1 + $0x48] sm:$0xff] }
   0x3   :  { %v89_v5 = vld [vmem:[%s464_s3 + $0x70] sm:$0xff]  ;;  %95 = vmatpush.msra.mxu1 %v90_v4  ;;  %v88_v7 = vld [vmem:[%s464_s3 + $0x68] sm:$0xff]  ;;  %v36_v8 = vld [vmem:[%s462_s1 + $0x40] sm:$0xff] }
   0x4   :  { %57 = vmatpush.msra.mxu0 %v40_v1  ;;  %v35_v9 = vld [vmem:[%s462_s1 + $0x38] sm:$0xff]  ;;  %v87_v10 = vld [vmem:[%s464_s3 + $0x60] sm:$0xff] }
   0x5   :  { %96 = vmatpush.msra.mxu1 %v89_v5 }
   0x6   :  { %58 = vmatpush.msra.mxu0 %v39_v2 }
   0x7   :  { %97 = vmatpush.msra.mxu1 %v88_v7 }
   0x8   :  { %59 = vmatpush.msra.mxu0 %v38_v3 }
   0xa   :  { %60 = vmatpush.msra.mxu0 %v37_v6 }
   0xb   :  { %12 = vsyncpa [#allocation3], 0  ;;  %v86_v11 = vld [vmem:[%s464_s3 + $0x58] sm:$0xff]  ;;  %v34_v12 = vld [vmem:[%s462_s1 + $0x30] sm:$0xff]  ;;  %98 = vmatpush.msra.mxu1 %v87_v10  ;;  %vm46_vm1 = vcmask 900096   ;;  %vm128_vm2 = vcmask 523264   ;;  %v152_v47 = vlaneseq }
   0xc   :  { %61 = vmatpush.msra.mxu0 %v36_v8  ;;  %v85_v13 = vld [vmem:[%s464_s3 + $0x50] sm:$0xff]  ;;  %v33_v14 = vld [vmem:[%s462_s1 + $0x28] sm:$0xff]  ;;  %v32_v16 = vld [vmem:[%s462_s1 + $0x20] sm:$0xff]  ;;  %vm159_vm4 = vcmask 1041408  }
   0xd   :  { %99 = vmatpush.msra.mxu1 %v86_v11  ;;  %v84_v15 = vld [vmem:[%s464_s3 + $0x48] sm:$0xff]  ;;  %v83_v17 = vld [vmem:[%s464_s3 + $0x40] sm:$0xff]  ;;  %v31_v18 = vld [vmem:[%s462_s1 + $0x18] sm:$0xff]  ;;  %v430_v48 = vand.u32 127, %v152_v47 }
   0xe   :  { %62 = vmatpush.msra.mxu0 %v35_v9  ;;  %v82_v19 = vld [vmem:[%s464_s3 + $0x38] sm:$0xff]  ;;  %v30_v20 = vld [vmem:[%s462_s1 + $0x10] sm:$0xff]  ;;  %v29_v22 = vld [vmem:[%s462_s1 + $0x8] sm:$0xff] }
   0xf   :  { %100 = vmatpush.msra.mxu1 %v85_v13  ;;  %v81_v21 = vld [vmem:[%s464_s3 + $0x30] sm:$0xff]  ;;  %v80_v23 = vld [vmem:[%s464_s3 + $0x28] sm:$0xff]  ;;  %v28_v24 = vld [vmem:[%s462_s1] sm:$0xff]  ;;  %vm154_vm3 = vcmp.lt.s32.totalorder %v430_v48, 10  ;;  %vm155_vm5 = vcmp.ge.s32.totalorder %v430_v48, 10  ;;  %vm156_vm6 = vcmp.lt.s32.totalorder %v430_v48, 20 }
  0x10   :  { %63 = vmatpush.msra.mxu0 %v34_v12  ;;  %v27_v25 = vld [vmem:[%s461_s0] sm:$0x3]  ;;  %v78_v27 = vld [vmem:[%s464_s3 + $0x18] sm:$0xff]  ;;  %v77_v28 = vld [vmem:[%s464_s3 + $0x10] sm:$0xff]  ;;  %s218_s0 = sshll.u32 %s468_s7, 4  ;;  %s219_s0 = int_to_ptr.hbm [resolvable:$true] %s218_s0 }
  0x11   :  { %101 = vmatpush.msra.mxu1 %v84_v15  ;;  %v79_v26 = vld [vmem:[%s464_s3 + $0x20] sm:$0xff]  ;;  %v76_v29 = vld [vmem:[%s464_s3 + $0x8] sm:$0xff]  ;;  %v123_v31 = vld [vmem:[%s466_s5 + $0x38] sm:$0xff] }
  0x12   :  { %64 = vmatpush.msra.mxu0 %v33_v14  ;;  %v75_v30 = vld [vmem:[%s464_s3] sm:$0xff]  ;;  %v122_v32 = vld [vmem:[%s466_s5 + $0x30] sm:$0xff]  ;;  %140 = vmatpush.msra.mxu2 %v123_v31  ;;  %v121_v33 = vld [vmem:[%s466_s5 + $0x28] sm:$0xff] }
  0x13   :  { %102 = vmatpush.msra.mxu1 %v83_v17  ;;  %v120_v34 = vld [vmem:[%s466_s5 + $0x20] sm:$0xff]  ;;  %v119_v35 = vld [vmem:[%s466_s5 + $0x18] sm:$0xff]  ;;  %v118_v40 = vld [vmem:[%s466_s5 + $0x10] sm:$0xff] }
  0x14   :  { %65 = vmatpush.msra.mxu0 %v32_v16  ;;  %141 = vmatpush.msra.mxu2 %v122_v32  ;;  %v231_v36 = vld [vmem:[%s463_s2] ss:$0 sm:$0xff]  ;;  %v117_v41 = vld [vmem:[%s466_s5 + $0x8] sm:$0xff]  ;;  %vm441_vm7 = vmand %vm155_vm5, %vm156_vm6 }
  0x15   :  { %103 = vmatpush.msra.mxu1 %v82_v19  ;;  %v116_v42 = vld [vmem:[%s466_s5] sm:$0xff] }
  0x16   :  { %66 = vmatpush.msra.mxu0 %v31_v18  ;;  %142 = vmatpush.msra.mxu2 %v121_v33  ;;  %v232_v43 = vld [vmem:[%s465_s4] ss:$0 sm:$0xff]  ;;  %s266_s4 = smov [#allocation2]  }
  0x17   :  { %104 = vmatpush.msra.mxu1 %v81_v21  ;;  %v233_v49 = vld [vmem:[%s467_s6] ss:$0 sm:$0xff]  ;;  %s216_s5 = sshll.u32 %s266_s4, 4  ;;  %s217_s5 = int_to_ptr.vmem [resolvable:$true] %s216_s5 }
  0x18   :  { %67 = vmatpush.msra.mxu0 %v30_v20  ;;  %143 = vmatpush.msra.mxu2 %v120_v34 }
  0x19   :  { %105 = vmatpush.msra.mxu1 %v80_v23 }
  0x1a   :  { %68 = vmatpush.msra.mxu0 %v29_v22  ;;  %144 = vmatpush.msra.mxu2 %v119_v35 }
  0x1b   :  { %106 = vmatpush.msra.mxu1 %v79_v26 }
  0x1c   :  { %69 = vmatpush.msra.mxu0 %v28_v24  ;;  %145 = vmatpush.msra.mxu2 %v118_v40 }
  0x1d   :  { %228 = vmatmul.msk.f32.vlgmr.msra.gmra.mxu0 %vm46_vm1, %v27_v25  ;;  %107 = vmatpush.msra.mxu1 %v78_v27 }
  0x1e   :  { %146 = vmatpush.msra.mxu2 %v117_v41 }
  0x1f   :  { %108 = vmatpush.msra.mxu1 %v77_v28 }
  0x20   :  { %147 = vmatpush.msra.mxu2 %v116_v42 }
  0x21   :  { %109 = vmatpush.msra.mxu1 %v76_v29 }
  0x23   :  { %110 = vmatpush.msra.mxu1 %v75_v30 }
  0x9a   :  { %v71_v37 = vpop.f32.mrf.mxu0 }
  0x9b   :  { %v72_v38 = vadd.f32 %v231_v36, %v71_v37 }
  0x9d   :  { %v74_v39 = vmax.f32 %v72_v38, 0.0 }
  0x9f   :  { %111 = vmatmul.f32.vlgmr.msra.gmra.mxu1 %v74_v39 }
 0x11c   :  { %v112_v44 = vpop.f32.mrf.mxu1 }
 0x11d   :  { %v113_v45 = vadd.f32 %v232_v43, %v112_v44 }
 0x11f   :  { %v115_v46 = vmax.f32 %v113_v45, 0.0 }
 0x121   :  { %229 = vmatmul.msk.f32.vlgmr.msra.gmra.mxu2 %vm128_vm2, %v115_v46 }
 0x1a4   :  { %v149_v50 = vpop.f32.mrf.mxu2 }
 0x1a5   :  { %v150_v51 = vadd.f32 %v233_v49, %v149_v50 }
 0x1a7   :  { %v158_v52 = vsel %vm154_vm3, %v150_v51, -1e+30  ;;  %v163_v55 = vsel %vm441_vm7, %v150_v51, -1e+30 }
 0x1a8   :  { %v160_v53 = vsel %vm159_vm4, %v158_v52, -inf  ;;  %v164_v56 = vsel %vm159_vm4, %v163_v55, -inf }
 0x1a9   :  { %161 = vmax.xlane.f32.xlu0 %v160_v53 }
 0x1b1   :  { %165 = vmax.xlane.f32.xlu0 %v164_v56 }
 0x21c   :  { %v162_v57 = vpop.xlane.xlu0 %161 }
 0x224   :  { %v166_v58 = vpop.xlane.xlu0 %165 }
 0x225   :  { %v167_v59 = vsel %vm154_vm3, %v162_v57, %v166_v58 }
 0x226   :  { %v168_v60 = vsub.f32 %v150_v51, %v167_v59 }
 0x228   :  { %v169_v61 = vsel %vm156_vm6, %v168_v60, -1e+30 }
 0x229   :  { %v170_v62 = vmul.f32 1.442695, %v169_v61 }
 0x22b   :  { %234 = vpow2.f32 %v170_v62 }
 0x231   :  { %v235_v63 = vpop.eup %234 }
 0x232   :  { %v172_v0 = vsel %vm154_vm3, %v235_v63, 0.0  ;;  %v176_v2 = vsel %vm441_vm7, %v235_v63, 0.0 }
 0x233   :  { %v173_v1 = vsel %vm159_vm4, %v172_v0, 0.0  ;;  %v177_v3 = vsel %vm159_vm4, %v176_v2, 0.0 }
 0x234   :  { %174 = vadd.xlane.f32.xlu1 %v173_v1 }
 0x23c   :  { %178 = vadd.xlane.f32.xlu1 %v177_v3 }
 0x2a7   :  { %v175_v4 = vpop.xlane.xlu1 %174 }
 0x2a8   :  { %236 = vrcp.f32 %v175_v4  ;;  %vm185_vm9 = vweird.f32 %v175_v4  ;;  %v191_v14 = vand.u32 2147483648, %v175_v4  ;;  %v189_v16 = vand.u32 2147483647, %v175_v4 }
 0x2aa   :  { %v192_v21 = vor.u32 1.1754944e-38, %v191_v14  ;;  %vm190_vm14 = vcmp.eq.f32.partialorder %v189_v16, 8.507059e+37 }
 0x2ae   :  { %v237_v5 = vpop.eup %236 }
 0x2af   :  { %v181_v6 = vmul.f32 %v237_v5, %v175_v4  ;;  %v179_v7 = vpop.xlane.xlu1 %178  ;;  %vm186_vm8 = vweird.f32 %v237_v5 }
 0x2b0   :  { %238 = vrcp.f32 %v179_v7  ;;  %v205_v15 = vand.u32 2147483648, %v179_v7  ;;  %v203_v18 = vand.u32 2147483647, %v179_v7  ;;  %vm187_vm11 = vmor %vm185_vm9, %vm186_vm8  ;;  %vm199_vm12 = vweird.f32 %v179_v7 }
 0x2b1   :  { %v182_v8 = vsub.f32 1.0, %v181_v6 }
 0x2b2   :  { %v206_v22 = vor.u32 1.1754944e-38, %v205_v15  ;;  %vm204_vm15 = vcmp.eq.f32.partialorder %v203_v18, 8.507059e+37 }
 0x2b3   :  { %v183_v9 = vmul.f32 %v237_v5, %v182_v8 }
 0x2b5   :  { %v184_v12 = vadd.f32 %v237_v5, %v183_v9 }
 0x2b6   :  { %v239_v10 = vpop.eup %238 }
 0x2b7   :  { %v195_v11 = vmul.f32 %v239_v10, %v179_v7  ;;  %vm200_vm10 = vweird.f32 %v239_v10  ;;  %v188_v20 = vsel %vm187_vm11, %v237_v5, %v184_v12 }
 0x2b8   :  { %vm201_vm13 = vmor %vm199_vm12, %vm200_vm10  ;;  %v193_v24 = vsel %vm190_vm14, %v192_v21, %v188_v20 }
 0x2b9   :  { %v196_v13 = vsub.f32 1.0, %v195_v11 }
 0x2bb   :  { %v197_v17 = vmul.f32 %v239_v10, %v196_v13 }
 0x2bd   :  { %v198_v19 = vadd.f32 %v239_v10, %v197_v17 }
 0x2bf   :  { %v202_v23 = vsel %vm201_vm13, %v239_v10, %v198_v19 }
 0x2c0   :  { %v207_v25 = vsel %vm204_vm15, %v206_v22, %v202_v23 }
 0x2c1   :  { %v208_v26 = vsel %vm154_vm3, %v193_v24, %v207_v25 }
 0x2c2   :  { %v209_v27 = vmul.f32 %v235_v63, %v208_v26 }
 0x2c4   :  { %210 = vst [vmem:[#allocation2] sm:$0x3] %v209_v27 }
 0x2c5   :  { %221 = dma.vmem_to_hbm [thread:$0]  %s217_s5, 32, %s219_s0, [#allocation3]  }
 0x2c6   :  { %264 = dma.done.wait [#allocation3], 32  }
 0x2c7   :  { %265 = vsyncadd [#allocation3], 4294967264 }
 0x2c8   :  { %226 = vsyncpa [#allocation3], 1 }

</bundles_post_ra>
